<compile_context>
chip_gen: v7x
topology: tpu7x:2x2x1
jax: 0.10.0
libtpu: 0.0.40
codegen_flags: <defaults>
</compile_context>

<pallas_src>
import jax
import jax.numpy as jnp
from jax.experimental import pallas as pl
from jax.experimental.pallas import tpu as pltpu


INPUT_DIM = 2       # MountainCar observation dim
HIDDEN = 32
OUTPUT_DIM = 4
BATCH = 8

LANES = 128                      # padded width of the fused hidden / weight slab
FUSED_HID = 2 * HIDDEN           # 64: predictor hidden | target hidden
FUSED_OUT = 2 * OUTPUT_DIM       # 8:  predictor out    | target out
MAX_TB = 2048                    # batch tile rows for large batches

# Parameter-slab row layout (each block starts on an 8-row tile boundary).
W1_OFF = 0                       # rows 0..7      : W1_cat (INPUT_DIM, 64) zero-padded
W2_OFF = 8                       # rows 8..135    : W2_blockdiag (64, 64) zero-padded to (128,128)
W3_OFF = W2_OFF + LANES          # rows 136..263  : W3_blockdiag (64, 8)  zero-padded to (128,128)
BIAS_OFF = W3_OFF + LANES        # rows 264..271  : row0=b1_cat, row1=b2_cat, row2=b3_cat
SLAB_ROWS = BIAS_OFF + 8         # 272


def _rnd_kernel(x_ref, slab_ref, out_ref):
    x = x_ref[...]                                           # (TB, INPUT_DIM)

    # ---- Layer 1 on the VPU (K=2 matmul would waste a full MXU pass) ----
    w1r0 = slab_ref[W1_OFF + 0:W1_OFF + 1, :]                # (1, 128)
    w1r1 = slab_ref[W1_OFF + 1:W1_OFF + 2, :]                # (1, 128)
    b1 = slab_ref[BIAS_OFF + 0:BIAS_OFF + 1, :]              # (1, 128)
    h = x[:, 0:1] * w1r0 + (x[:, 1:2] * w1r1 + b1)           # (TB, 128) broadcast FMAs
    h = jnp.maximum(h, 0.0)                                  # ReLU

    # ---- Layer 2 (MXU): fused block-diagonal (128, 128) weight ----
    w2 = slab_ref[W2_OFF:W2_OFF + LANES, :]                  # (128, 128)
    b2 = slab_ref[BIAS_OFF + 1:BIAS_OFF + 2, :]              # (1, 128)
    h = jnp.dot(h, w2, preferred_element_type=jnp.float32) + b2
    h = jnp.maximum(h, 0.0)                                  # ReLU

    # ---- Layer 3 (MXU): fused block-diagonal (128, 128) weight ----
    w3 = slab_ref[W3_OFF:W3_OFF + LANES, :]                  # (128, 128)
    b3 = slab_ref[BIAS_OFF + 2:BIAS_OFF + 3, :]              # (1, 128)
    y = jnp.dot(h, w3, preferred_element_type=jnp.float32) + b3

    # Lane-dense 128-wide store (lanes 0..3 = predictor, 4..7 = target, rest zeros).
    out_ref[...] = y.astype(out_ref.dtype)


def pack_params(params):
    """Pack both MLPs into one lane-dense (SLAB_ROWS, 128) f32 slab (done once)."""
    w1_cat = jnp.concatenate([params["p_w1"], params["t_w1"]], axis=1)   # (INPUT_DIM, 64)

    w2_bd = jnp.zeros((FUSED_HID, FUSED_HID), jnp.float32)
    w2_bd = w2_bd.at[:HIDDEN, :HIDDEN].set(params["p_w2"])
    w2_bd = w2_bd.at[HIDDEN:, HIDDEN:].set(params["t_w2"])               # (64, 64)

    w3_bd = jnp.zeros((FUSED_HID, FUSED_OUT), jnp.float32)
    w3_bd = w3_bd.at[:HIDDEN, :OUTPUT_DIM].set(params["p_w3"])
    w3_bd = w3_bd.at[HIDDEN:, OUTPUT_DIM:].set(params["t_w3"])           # (64, 8)

    b1_cat = jnp.concatenate([params["p_b1"], params["t_b1"]], axis=1)   # (1, 64)
    b2_cat = jnp.concatenate([params["p_b2"], params["t_b2"]], axis=1)   # (1, 64)
    b3_cat = jnp.concatenate([params["p_b3"], params["t_b3"]], axis=1)   # (1, 8)

    slab = jnp.zeros((SLAB_ROWS, LANES), jnp.float32)
    slab = slab.at[W1_OFF:W1_OFF + INPUT_DIM, 0:FUSED_HID].set(w1_cat)
    slab = slab.at[W2_OFF:W2_OFF + FUSED_HID, 0:FUSED_HID].set(w2_bd)
    slab = slab.at[W3_OFF:W3_OFF + FUSED_HID, 0:FUSED_OUT].set(w3_bd)
    slab = slab.at[BIAS_OFF + 0, 0:FUSED_HID].set(b1_cat[0])
    slab = slab.at[BIAS_OFF + 1, 0:FUSED_HID].set(b2_cat[0])
    slab = slab.at[BIAS_OFF + 2, 0:FUSED_OUT].set(b3_cat[0])
    return slab


def rnd_forward(state, slab):
    """state: (B, INPUT_DIM) f32. slab: packed params from pack_params()."""
    B = state.shape[0]

    # Fixed batch tile with remainder padding. Small batches run as a single block;
    # large batches always tile at MAX_TB rows (pipelined, and the 'parallel' axis
    # shards across TensorCores on v7x). Never TB=B for large B (VMEM hazard).
    if B <= MAX_TB:
        TB = B
        B_pad = B
    else:
        TB = MAX_TB
        B_pad = pl.cdiv(B, TB) * TB
    if B_pad != B:
        state = jnp.pad(state, ((0, B_pad - B), (0, 0)))
    grid = (B_pad // TB,)

    cost = pl.CostEstimate(
        flops=2 * 2 * B_pad * LANES * LANES + 6 * B_pad * LANES,  # 2 MXU layers + VPU layer 1
        transcendentals=0,
        bytes_accessed=4 * (B_pad * INPUT_DIM + B_pad * LANES + SLAB_ROWS * LANES),
    )

    out = pl.pallas_call(
        _rnd_kernel,
        out_shape=jax.ShapeDtypeStruct((B_pad, LANES), jnp.float32),
        grid=grid,
        in_specs=[
            pl.BlockSpec((TB, INPUT_DIM), lambda i: (i, 0)),
            # Grid-invariant block index -> the slab is fetched once and kept resident.
            pl.BlockSpec((SLAB_ROWS, LANES), lambda i: (0, 0)),
        ],
        out_specs=pl.BlockSpec((TB, LANES), lambda i: (i, 0)),
        compiler_params=pltpu.CompilerParams(
            dimension_semantics=("parallel",)),
        cost_estimate=cost,
    )(state, slab)

    predict = out[:B, :OUTPUT_DIM]
    target = out[:B, OUTPUT_DIM:FUSED_OUT]
    return predict, target


def init_params(key):
    """Deterministic init mimicking nn.Linear defaults: U(-1/sqrt(fan_in), 1/sqrt(fan_in)).
    Weights stored as (in_features, out_features); biases as (1, out_features)."""
    dims = [(INPUT_DIM, HIDDEN), (HIDDEN, HIDDEN), (HIDDEN, OUTPUT_DIM)]
    params = {}
    for prefix in ("p", "t"):  # predictor, target
        for li, (fan_in, fan_out) in enumerate(dims, start=1):
            key, kw, kb = jax.random.split(key, 3)
            bound = 1.0 / jnp.sqrt(jnp.float32(fan_in))
            params[f"{prefix}_w{li}"] = jax.random.uniform(
                kw, (fan_in, fan_out), jnp.float32, -bound, bound)
            params[f"{prefix}_b{li}"] = jax.random.uniform(
                kb, (1, fan_out), jnp.float32, -bound, bound)
    return params


def rnd_forward_ref(state, params):
    """Pure-JAX reference of the same forward pass (for a sanity check)."""
    def mlp(prefix):
        h = jnp.maximum(state @ params[f"{prefix}_w1"] + params[f"{prefix}_b1"], 0.0)
        h = jnp.maximum(h @ params[f"{prefix}_w2"] + params[f"{prefix}_b2"], 0.0)
        return h @ params[f"{prefix}_w3"] + params[f"{prefix}_b3"]
    return mlp("p"), mlp("t")


# TODO(synk): training-side pieces (Adam update, MSE loss, grad clamp, error
# normalization bookkeeping) are host/optimizer logic with no Pallas equivalent here.

if __name__ == "__main__":
    key = jax.random.PRNGKey(0)
    key, kparams, kstate = jax.random.split(key, 3)

    params = init_params(kparams)
    slab = pack_params(params)
    state = jax.random.normal(kstate, (BATCH, INPUT_DIM), jnp.float32)

    predict, target = rnd_forward(state, slab)
    jax.block_until_ready((predict, target))

    # sanity check against pure-JAX reference
    pred_ref, targ_ref = rnd_forward_ref(state, params)
    assert predict.shape == (BATCH, OUTPUT_DIM) and target.shape == (BATCH, OUTPUT_DIM)
    assert jnp.allclose(predict, pred_ref, atol=1e-5, rtol=1e-5)
    assert jnp.allclose(target, targ_ref, atol=1e-5, rtol=1e-5)

    print("KERNEL_OK")
</pallas_src>

<mosaic_0001>
module attributes {stable_mosaic.version = 11 : i64} {
  func.func @_rnd_kernel(%arg0: i32, %arg1: memref<8x2xf32, #tpu.memory_space<vmem>>, %arg2: memref<272x128xf32, #tpu.memory_space<vmem>>, %arg3: memref<8x128xf32, #tpu.memory_space<vmem>>) attributes {dimension_semantics = [#tpu.dimension_semantics<parallel>], iteration_bounds = array<i64: 1>, scalar_prefetch = 0 : i64, scratch_operands = 0 : i64, tpu.core_type = #tpu.core_type<tc>, window_params = [{transform_indices = @transform_0, window_bounds = array<i64: 8, 2>}, {pipeline_mode = #tpu.pipeline_mode<synchronous>, transform_indices = @transform_1, window_bounds = array<i64: 272, 128>}, {transform_indices = @transform_2, window_bounds = array<i64: 8, 128>}]} {
    %c0 = arith.constant 0 : index
    %c0_0 = arith.constant 0 : index
    %0 = vector.load %arg1[%c0, %c0_0] : memref<8x2xf32, #tpu.memory_space<vmem>>, vector<8x2xf32>
    %c0_1 = arith.constant 0 : index
    %c0_2 = arith.constant 0 : index
    %1 = vector.load %arg2[%c0_1, %c0_2] : memref<272x128xf32, #tpu.memory_space<vmem>>, vector<1x128xf32>
    %c1 = arith.constant 1 : index
    %c0_3 = arith.constant 0 : index
    %2 = vector.load %arg2[%c1, %c0_3] : memref<272x128xf32, #tpu.memory_space<vmem>>, vector<1x128xf32>
    %c264 = arith.constant 264 : index
    %c0_4 = arith.constant 0 : index
    %3 = vector.load %arg2[%c264, %c0_4] : memref<272x128xf32, #tpu.memory_space<vmem>>, vector<1x128xf32>
    %4 = vector.extract_strided_slice %0 {offsets = [0, 0], sizes = [8, 1], strides = [1, 1]} : vector<8x2xf32> to vector<8x1xf32>
    %5 = vector.broadcast %4 : vector<8x1xf32> to vector<8x128xf32>
    %6 = vector.broadcast %1 : vector<1x128xf32> to vector<8x128xf32>
    %7 = arith.mulf %5, %6 : vector<8x128xf32>
    %8 = vector.extract_strided_slice %0 {offsets = [0, 1], sizes = [8, 1], strides = [1, 1]} : vector<8x2xf32> to vector<8x1xf32>
    %9 = vector.broadcast %8 : vector<8x1xf32> to vector<8x128xf32>
    %10 = vector.broadcast %2 : vector<1x128xf32> to vector<8x128xf32>
    %11 = arith.mulf %9, %10 : vector<8x128xf32>
    %12 = vector.broadcast %3 : vector<1x128xf32> to vector<8x128xf32>
    %13 = arith.addf %11, %12 : vector<8x128xf32>
    %14 = arith.addf %7, %13 : vector<8x128xf32>
    %cst = arith.constant 0.000000e+00 : f32
    %15 = vector.broadcast %cst : f32 to vector<8x128xf32>
    %16 = arith.maximumf %14, %15 : vector<8x128xf32>
    %c8 = arith.constant 8 : index
    %c0_5 = arith.constant 0 : index
    %17 = vector.load %arg2[%c8, %c0_5] : memref<272x128xf32, #tpu.memory_space<vmem>>, vector<128x128xf32>
    %c265 = arith.constant 265 : index
    %c0_6 = arith.constant 0 : index
    %18 = vector.load %arg2[%c265, %c0_6] : memref<272x128xf32, #tpu.memory_space<vmem>>, vector<1x128xf32>
    %cst_7 = arith.constant dense<0.000000e+00> : vector<8x128xf32>
    %19 = tpu.matmul %16, %17, %cst_7 {dimension_numbers = #tpu.dot_dimension_numbers<[1], [0], [0], [1], [0, 0, 1, 1], [], []>} : vector<8x128xf32>, vector<128x128xf32>, vector<8x128xf32> -> vector<8x128xf32>
    %20 = vector.broadcast %18 : vector<1x128xf32> to vector<8x128xf32>
    %21 = arith.addf %19, %20 : vector<8x128xf32>
    %cst_8 = arith.constant 0.000000e+00 : f32
    %22 = vector.broadcast %cst_8 : f32 to vector<8x128xf32>
    %23 = arith.maximumf %21, %22 : vector<8x128xf32>
    %c136 = arith.constant 136 : index
    %c0_9 = arith.constant 0 : index
    %24 = vector.load %arg2[%c136, %c0_9] : memref<272x128xf32, #tpu.memory_space<vmem>>, vector<128x128xf32>
    %c266 = arith.constant 266 : index
    %c0_10 = arith.constant 0 : index
    %25 = vector.load %arg2[%c266, %c0_10] : memref<272x128xf32, #tpu.memory_space<vmem>>, vector<1x128xf32>
    %cst_11 = arith.constant dense<0.000000e+00> : vector<8x128xf32>
    %26 = tpu.matmul %23, %24, %cst_11 {dimension_numbers = #tpu.dot_dimension_numbers<[1], [0], [0], [1], [0, 0, 1, 1], [], []>} : vector<8x128xf32>, vector<128x128xf32>, vector<8x128xf32> -> vector<8x128xf32>
    %27 = vector.broadcast %25 : vector<1x128xf32> to vector<8x128xf32>
    %28 = arith.addf %26, %27 : vector<8x128xf32>
    %c0_12 = arith.constant 0 : index
    %c0_13 = arith.constant 0 : index
    %29 = vector.load %arg3[%c0_12, %c0_13] : memref<8x128xf32, #tpu.memory_space<vmem>>, vector<8x128xf32>
    tpu.vector_store %arg3[%c0_12, %c0_13], %28 {strides = array<i32>} : memref<8x128xf32, #tpu.memory_space<vmem>>, vector<8x128xf32>,
    return
  }
  func.func @transform_0(%arg0: i32) -> (i32, i32) {
    %c0_i32 = arith.constant 0 : i32
    %c0_i32_0 = arith.constant 0 : i32
    return %arg0, %c0_i32 : i32, i32
  }
  func.func @transform_1(%arg0: i32) -> (i32, i32) {
    %c0_i32 = arith.constant 0 : i32
    %c0_i32_0 = arith.constant 0 : i32
    %c0_i32_1 = arith.constant 0 : i32
    return %c0_i32, %c0_i32_0 : i32, i32
  }
  func.func @transform_2(%arg0: i32) -> (i32, i32) {
    %c0_i32 = arith.constant 0 : i32
    %c0_i32_0 = arith.constant 0 : i32
    return %arg0, %c0_i32 : i32, i32
  }
}

</mosaic_0001>

<bundles_post_ra>
// kernel: tpu_custom_call.1
= control target key start
LH: loop header
LB: loop body
LE: loop exit
PB: predicated region body
PF: predicated region fallthrough
CT: control target
= control target key end

     0   :  { %7 = vsyncpa [#allocation3], 0  ;;  %s539_s0 = inlined_call_operand.vmem [shape: f32[8,2], index: 0, kind: input, shape index: {}]   ;;  %s540_s1 = inlined_call_operand.hbm [shape: f32[272,128], index: 1, kind: input, shape index: {}]   ;;  %s541_s2 = inlined_call_operand.hbm [shape: f32[8,128], index: 2, kind: output, shape index: {}]  }
   0x1   :  { %8 = vsyncpa [#allocation4], 0  ;;  %s472_s9 = smov [#allocation2]   ;;  %s424_s13 = scalar_lea.hbm %s540_s1, 4352 }
   0x2   :  { %s16_s10 = sshll.u32 %s472_s9, 4  ;;  %p425_p0 = scmp.ne.s32.totalorder %s540_s1, %s424_s13  ;;  %s17_s10 = int_to_ptr.vmem [resolvable:$true] %s16_s10 }
   0x3   :  { %p428_p1 = scmp.lt.u32.totalorder %s424_s13, %s540_s1 }
   0x5   :  { %p430_p2 = pnand %p428_p1, %p425_p0 }
   0x7   :  { %433 = shalt.err (!%p430_p2)
}
   0x8   :  { %s434_s18 = scalar_lea.vmem %s17_s10, 4352  ;;  %p439_p4 = scmp.lt.s32.totalorder %s17_s10, %s17_s10 }
   0x9   :  { %p435_p3 = scmp.ne.s32.totalorder %s17_s10, %s434_s18  ;;  %p440_p5 = scmp.lt.s32.totalorder %s434_s18, %s434_s18 }
   0xb   :  { %p441_p6 = por %p440_p5, %p439_p4 }
   0xd   :  { %p442_p7 = pnand %p441_p6, %p435_p3 }
   0xf   :  { %445 = shalt.err (!%p442_p7)
}
  0x10   :  { %s473_s19 = smov 128   ;;  %s474_s20 = smov 8  }
  0x11   :  { %22 = dma.hbm_to_vmem [thread:$0]  %s540_s1, 4352, %s17_s10, [#allocation3], %s473_s19, %s473_s19, %s474_s20  }
  0x12   :  { %468 = dma.done.wait [#allocation3], 4352  }
  0x13   :  { %469 = vsyncadd [#allocation3], 4294962944  ;;  %v475_v0 = vmov 1   ;;  %v476_v1 = vmov 0.0|0.0   ;;  %v26_v2 = vld [vmem:[%s539_s0] sm:$0xff]  ;;  %v56_v3 = vld [vmem:[#allocation2 + $0x8] sm:$0xff] }
  0x14   :  { %421 = vset.pattern.permute.xlu0 %v475_v0  ;;  %364 = vmatprep.subr.bf16.mxu0 %v476_v1  ;;  %v57_v4 = vld [vmem:[#allocation2 + $0x10] sm:$0xff]  ;;  %v58_v6 = vld [vmem:[#allocation2 + $0x18] sm:$0xff]  ;;  %v59_v7 = vld [vmem:[#allocation2 + $0x20] sm:$0xff]  ;;  %v477_v11 = vmov 0   ;;  %vm478_vm0 = vmmov 0   ;;  %v479_v18 = vmov 0.0  }
  0x15   :  { %388 = vmatprep.subr.bf16.mxu1 %v476_v1  ;;  %41 = vperm.xlu0 %421, %v26_v2   ;;  %v365_v5 = vpack.c.bf16 %v57_v4, %v56_v3  ;;  %v368_v8 = vpack.c.bf16 %v59_v7, %v58_v6  ;;  %v60_v9 = vld [vmem:[#allocation2 + $0x28] sm:$0xff]  ;;  %v61_v10 = vld [vmem:[#allocation2 + $0x30] sm:$0xff]  ;;  %v62_v13 = vld [vmem:[#allocation2 + $0x38] sm:$0xff]  ;;  %s480_s0 = smov [#allocation5]  }
  0x16   :  { %v371_v12 = vpack.c.bf16 %v61_v10, %v60_v9  ;;  %v63_v14 = vld [vmem:[#allocation2 + $0x40] sm:$0xff]  ;;  %v64_v16 = vld [vmem:[#allocation2 + $0x48] sm:$0xff]  ;;  %v65_v17 = vld [vmem:[#allocation2 + $0x50] sm:$0xff]  ;;  %326 = vmatprep.mubr.msk.f32.mxu0 %vm478_vm0, %v479_v18  ;;  %361 = vmatprep.mubr.msk.f32.mxu1 %vm478_vm0, %v479_v18  ;;  %s246_s1 = sshll.u32 %s480_s0, 4  ;;  %s247_s1 = int_to_ptr.vmem [resolvable:$true] %s246_s1 }
  0x17   :  { %366 = vmatpush3.bf16.msra.mxu0 %v365_v5  ;;  %v374_v15 = vpack.c.bf16 %v63_v14, %v62_v13  ;;  %v148_v19 = vld [vmem:[#allocation2 + $0x88] sm:$0xff]  ;;  %v149_v20 = vld [vmem:[#allocation2 + $0x90] sm:$0xff]  ;;  %v150_v21 = vld [vmem:[#allocation2 + $0x98] sm:$0xff]  ;;  %v377_v24 = vpack.c.bf16 %v65_v17, %v64_v16  ;;  %s446_s25 = scalar_lea.vmem %s247_s1, 128  ;;  %p451_p9 = scmp.lt.s32.totalorder %s247_s1, %s247_s1 }
  0x18   :  { %367 = vmatprep.subr.bf16.mxu0 %v476_v1  ;;  %v389_v22 = vpack.c.bf16 %v149_v20, %v148_v19  ;;  %v151_v23 = vld [vmem:[#allocation2 + $0xa0] sm:$0xff]  ;;  %v66_v25 = vld [vmem:[#allocation2 + $0x58] sm:$0xff]  ;;  %v152_v28 = vld [vmem:[#allocation2 + $0xa8] sm:$0xff]  ;;  %p447_p8 = scmp.ne.s32.totalorder %s247_s1, %s446_s25  ;;  %p452_p10 = scmp.lt.s32.totalorder %s446_s25, %s446_s25 }
  0x19   :  { %422 = vset.pattern.permute.xlu0 %v477_v11  ;;  %v392_v26 = vpack.c.bf16 %v151_v23, %v150_v21  ;;  %v67_v27 = vld [vmem:[#allocation2 + $0x60] sm:$0xff]  ;;  %v153_v29 = vld [vmem:[#allocation2 + $0xb0] sm:$0xff]  ;;  %v68_v31 = vld [vmem:[#allocation2 + $0x68] sm:$0xff] }
  0x1a   :  { %32 = vperm.xlu0 %422, %v26_v2   ;;  %390 = vmatpush3.bf16.msra.mxu1 %v389_v22  ;;  %v380_v30 = vpack.c.bf16 %v67_v27, %v66_v25  ;;  %v395_v32 = vpack.c.bf16 %v153_v29, %v152_v28  ;;  %v69_v33 = vld [vmem:[#allocation2 + $0x70] sm:$0xff]  ;;  %v154_v34 = vld [vmem:[#allocation2 + $0xb8] sm:$0xff]  ;;  %v155_v35 = vld [vmem:[#allocation2 + $0xc0] sm:$0xff]  ;;  %p453_p11 = por %p452_p10, %p451_p9 }
  0x1b   :  { %369 = vmatpush3.bf16.msra.mxu0 %v368_v8  ;;  %391 = vmatprep.subr.bf16.mxu1 %v476_v1  ;;  %v383_v36 = vpack.c.bf16 %v69_v33, %v68_v31  ;;  %v70_v37 = vld [vmem:[#allocation2 + $0x78] sm:$0xff]  ;;  %v398_v38 = vpack.c.bf16 %v155_v35, %v154_v34  ;;  %v71_v39 = vld [vmem:[#allocation2 + $0x80] sm:$0xff]  ;;  %v156_v40 = vld [vmem:[#allocation2 + $0xc8] sm:$0xff] }
  0x1c   :  { %370 = vmatprep.subr.bf16.mxu0 %v476_v1  ;;  %v157_v41 = vld [vmem:[#allocation2 + $0xd0] sm:$0xff]  ;;  %v386_v42 = vpack.c.bf16 %v71_v39, %v70_v37  ;;  %v158_v44 = vld [vmem:[#allocation2 + $0xd8] sm:$0xff]  ;;  %v159_v45 = vld [vmem:[#allocation2 + $0xe0] sm:$0xff]  ;;  %p454_p12 = pnand %p453_p11, %p447_p8 }
  0x1d   :  { %v401_v43 = vpack.c.bf16 %v157_v41, %v156_v40  ;;  %v404_v46 = vpack.c.bf16 %v159_v45, %v158_v44  ;;  %v160_v47 = vld [vmem:[#allocation2 + $0xe8] sm:$0xff]  ;;  %v161_v48 = vld [vmem:[#allocation2 + $0xf0] sm:$0xff]  ;;  %v256_v50 = vld [vmem:[#allocation2 + $0x1] ss:$0 sm:$0xff] }
  0x1e   :  { %423 = vset.pattern.permute.xlu0 %v475_v0  ;;  %393 = vmatpush3.bf16.msra.mxu1 %v392_v26  ;;  %v407_v49 = vpack.c.bf16 %v161_v48, %v160_v47  ;;  %v257_v53 = vld [vmem:[#allocation2 + $0x108] ss:$0 sm:$0xff]  ;;  %v255_v54 = vld [vmem:[#allocation2] ss:$0 sm:$0xff]  ;;  %v162_v60 = vld [vmem:[#allocation2 + $0xf8] sm:$0xff] }
  0x1f   :  { %372 = vmatpush3.bf16.msra.mxu0 %v371_v12  ;;  %394 = vmatprep.subr.bf16.mxu1 %v476_v1  ;;  %v163_v61 = vld [vmem:[#allocation2 + $0x100] sm:$0xff]  ;;  %v258_v63 = vld [vmem:[#allocation2 + $0x109] ss:$0 sm:$0xff]  ;;  %v259_v4 = vld [vmem:[#allocation2 + $0x10a] ss:$0 sm:$0xff] }
  0x20   :  { %373 = vmatprep.subr.bf16.mxu0 %v476_v1  ;;  %v410_v62 = vpack.c.bf16 %v163_v61, %v162_v60 }
  0x22   :  { %396 = vmatpush3.bf16.msra.mxu1 %v395_v32 }
  0x23   :  { %375 = vmatpush3.bf16.msra.mxu0 %v374_v15  ;;  %397 = vmatprep.subr.bf16.mxu1 %v476_v1 }
  0x24   :  { %376 = vmatprep.subr.bf16.mxu0 %v476_v1 }
  0x26   :  { %399 = vmatpush3.bf16.msra.mxu1 %v398_v38 }
  0x27   :  { %378 = vmatpush3.bf16.msra.mxu0 %v377_v24  ;;  %400 = vmatprep.subr.bf16.mxu1 %v476_v1 }
  0x28   :  { %379 = vmatprep.subr.bf16.mxu0 %v476_v1 }
  0x2a   :  { %402 = vmatpush3.bf16.msra.mxu1 %v401_v43 }
  0x2b   :  { %381 = vmatpush3.bf16.msra.mxu0 %v380_v30  ;;  %403 = vmatprep.subr.bf16.mxu1 %v476_v1 }
  0x2c   :  { %382 = vmatprep.subr.bf16.mxu0 %v476_v1 }
  0x2e   :  { %405 = vmatpush3.bf16.msra.mxu1 %v404_v46 }
  0x2f   :  { %384 = vmatpush3.bf16.msra.mxu0 %v383_v36  ;;  %406 = vmatprep.subr.bf16.mxu1 %v476_v1 }
  0x30   :  { %385 = vmatprep.subr.bf16.mxu0 %v476_v1 }
  0x32   :  { %408 = vmatpush3.bf16.msra.mxu1 %v407_v49 }
  0x33   :  { %387 = vmatpush3.bf16.msra.mxu0 %v386_v42  ;;  %409 = vmatprep.subr.bf16.mxu1 %v476_v1 }
  0x36   :  { %411 = vmatpush3.bf16.msra.mxu1 %v410_v62 }
  0x94   :  { %v42_v51 = vpop.permute.xlu0 %41 }
  0x95   :  { %v48_v52 = vmul.f32 %v256_v50, %v42_v51 }
  0x97   :  { %v53_v56 = vadd.f32 %v257_v53, %v48_v52 }
  0x99   :  { %v33_v55 = vpop.permute.xlu0 %32 }
  0x9a   :  { %v39_v57 = vmul.f32 %v255_v54, %v33_v55 }
  0x9c   :  { %v54_v58 = vadd.f32 %v53_v56, %v39_v57 }
  0x9e   :  { %v55_v59 = vmax.f32 %v54_v58, 0.0 }
  0xa0   :  { %327 = vmatmul.mubr.f32.vlgmr.msra.gmra.mrb[0].mxu0 %v55_v59 }
 0x173   :  { %v143_v0 = vpop.f32.mrb[0].mxu0 }
 0x174   :  { %v144_v2 = vadd.f32 %v258_v63, %v143_v0  ;;  %v328_v3 = vpop.f32.mrb[1].mxu0 }
 0x176   :  { %v147_v1 = vmax.f32 %v144_v2, 0.0 }
 0x178   :  { %362 = vmatmul.mubr.f32.vlgmr.msra.gmra.mrb[0].mxu1 %v147_v1 }
 0x24b   :  { %v235_v5 = vpop.f32.mrb[0].mxu1 }
 0x24c   :  { %v236_v6 = vadd.f32 %v259_v4, %v235_v5  ;;  %v363_v7 = vpop.f32.mrb[1].mxu1 }
 0x24e   :  { %239 = vst [vmem:[#allocation5] sm:$0xff] %v236_v6 }
 0x24f   :  { %457 = shalt.err (!%p454_p12)
}
 0x250   :  { %s458_s28 = scalar_lea.hbm %s541_s2, 128 }
 0x251   :  { %p459_p13 = scmp.ne.s32.totalorder %s541_s2, %s458_s28  ;;  %p462_p0 = scmp.lt.u32.totalorder %s458_s28, %s541_s2 }
 0x253   :  { %p464_p1 = pnand %p462_p0, %p459_p13 }
 0x255   :  { %467 = shalt.err (!%p464_p1)
}
 0x256   :  { %249 = dma.vmem_to_hbm [thread:$0]  %s247_s1, 128, %s541_s2, [#allocation4]  }
 0x257   :  { %470 = dma.done.wait [#allocation4], 128  }
 0x258   :  { %471 = vsyncadd [#allocation4], 4294967168 }
 0x259   :  { %253 = vsyncpa [#allocation3], 1 }
 0x25a   :  { %254 = vsyncpa [#allocation4], 1 }

</bundles_post_ra>
